<compile_context>
chip_gen: v7x
topology: tpu7x:2x2x1
jax: 0.10.0
libtpu: 0.0.40
codegen_flags: <defaults>
</compile_context>

<pallas_src>
import functools

import jax
import jax.numpy as jnp
from jax.experimental import pallas as pl
from jax.experimental.pallas import tpu as pltpu


# ----------------------------------------------------------------------------
# Fused Pallas kernel
# ----------------------------------------------------------------------------
def _disc_fused_kernel(*refs, num_layers, dilations, widths, paddings):
    """Fused (dilated causal conv1d + bias + ReLU) x num_layers -> Linear(.,1).

    refs layout (all VMEM):
      refs[0]                          x_ref      [L, C0]
      refs[1 + 2*i], refs[2 + 2*i]     w_i, b_i   [w*Cin, Cout], [1, Cout]
      refs[1 + 2*n], refs[2 + 2*n]     w_fc, b_fc [1, C_last],   [1, 1]
      refs[3 + 2*n]                    o_ref      [1, L_out]   (lane-dense)
      refs[4 + 2*n : ]                 pad_i scratch  [pad_i + Lin_i, Cin_i]
    """
    x_ref = refs[0]
    layer_refs = refs[1:1 + 2 * num_layers]
    wfc_ref = refs[1 + 2 * num_layers]
    bfc_ref = refs[2 + 2 * num_layers]
    o_ref = refs[3 + 2 * num_layers]
    pad_refs = refs[4 + 2 * num_layers:]

    def conv_relu(act, pad_ref, w_ref, b_ref, dilation, width, padding):
        """act: [Lin, Cin] -> [Lout, Cout], causal left zero padding."""
        l_in, c_in = act.shape
        l_out = l_in + padding - dilation * (width - 1)
        # Zero the causal-pad rows and place the activation in the interior of
        # the VMEM scratch slab (padding never touches HBM).
        pad_ref[0:padding, :] = jnp.zeros((padding, c_in), jnp.float32)
        pad_ref[padding:padding + l_in, :] = act
        # im2col: one deep MXU matmul instead of `width` shallow ones.
        taps = [pad_ref[k * dilation:k * dilation + l_out, :]
                for k in range(width)]
        im2col = jnp.concatenate(taps, axis=-1)            # [Lout, width*Cin]
        y = jnp.dot(im2col, w_ref[...],
                    preferred_element_type=jnp.float32)    # K = width*Cin
        y = y + b_ref[...]                                 # [1, Cout] bcast
        return jnp.maximum(y, 0.0)

    a = x_ref[...].astype(jnp.float32)                     # [L, C0]
    for i in range(num_layers):
        a = conv_relu(a, pad_refs[i],
                      layer_refs[2 * i], layer_refs[2 * i + 1],
                      dilations[i], widths[i], paddings[i])

    # Final Linear(out_size, 1): VPU reduction over the 16 channel lanes,
    # stored lane-dense as one [1, L_out] row (reshaped outside).
    logits = jnp.sum(a * wfc_ref[...], axis=-1)            # [L_out]
    o_ref[...] = (logits[None, :] + bfc_ref[...]).astype(o_ref.dtype)


# ----------------------------------------------------------------------------
# Parameters / one-time weight preparation (hoisted out of forward)
# ----------------------------------------------------------------------------
class Params:
    # (out_chan, in_chan, width) per layer — small synthetic config.
    decoder_kernels = [(32, 16, 3), (32, 32, 3), (16, 32, 3)]
    discriminator_kernels = decoder_kernels
    decoder_dilations = [1, 2, 4]
    decoder_paddings = [2, 4, 8]          # = dilation * (width - 1)


def init_discriminator(key, params):
    """Mirrors the PyTorch parameter layout: conv kernels [oc, ic, w]."""
    weights = {"kernels": [], "biases": []}
    for (oc, ic, w) in params.decoder_kernels:
        key, k1, k2 = jax.random.split(key, 3)
        weights["kernels"].append(
            0.05 * jax.random.normal(k1, (oc, ic, w), jnp.float32))
        weights["biases"].append(
            0.05 * jax.random.normal(k2, (oc,), jnp.float32))
    out_size = params.discriminator_kernels[-1][0]
    key, k1, k2 = jax.random.split(key, 3)
    weights["fc_w"] = 0.05 * jax.random.normal(k1, (out_size, 1), jnp.float32)
    weights["fc_b"] = 0.05 * jax.random.normal(k2, (1, 1), jnp.float32)
    return weights


def prepare_weights(weights):
    """One-time re-layout for the fused kernel (im2col weights, row fc)."""
    prep = {"conv": []}
    for k, b in zip(weights["kernels"], weights["biases"]):
        oc, ic, w = k.shape
        w_flat = jnp.transpose(k, (2, 1, 0)).reshape(w * ic, oc)  # [w*Cin, Cout]
        prep["conv"].append((w_flat, b.reshape(1, oc)))
    prep["w_fc"] = weights["fc_w"].reshape(1, -1)                 # [1, C_last]
    prep["b_fc"] = weights["fc_b"].reshape(1, 1)                  # [1, 1]
    return prep


# ----------------------------------------------------------------------------
# Forward wrapper (single pallas_call)
# ----------------------------------------------------------------------------
def discriminator_forward(prep, params, decoder_input):
    """decoder_input: [B, seq_len, embed]  ->  [B, seq_len, 1]"""
    B, seq_len, c0 = decoder_input.shape
    num_layers = len(prep["conv"])
    dilations = tuple(params.decoder_dilations)
    paddings = tuple(params.decoder_paddings)
    widths = tuple(k[2] for k in params.decoder_kernels)
    c_ins = tuple(k[1] for k in params.decoder_kernels)

    # Per-layer lengths after the causal crop: out = in + p - d*(w-1).
    lens = [seq_len]
    for d, w, p in zip(dilations, widths, paddings):
        lens.append(lens[-1] + p - d * (w - 1))
    l_out = lens[-1]

    kern = functools.partial(_disc_fused_kernel, num_layers=num_layers,
                             dilations=dilations, widths=widths,
                             paddings=paddings)

    def _full_spec(arr):
        nd = arr.ndim
        return pl.BlockSpec(arr.shape, lambda b, _nd=nd: (0,) * _nd)

    weight_args, weight_specs = [], []
    for w_flat, b2 in prep["conv"]:
        weight_args += [w_flat, b2]
        weight_specs += [_full_spec(w_flat), _full_spec(b2)]
    weight_args += [prep["w_fc"], prep["b_fc"]]
    weight_specs += [_full_spec(prep["w_fc"]), _full_spec(prep["b_fc"])]

    scratch = [pltpu.VMEM((paddings[i] + lens[i], c_ins[i]), jnp.float32)
               for i in range(num_layers)]

    out = pl.pallas_call(
        kern,
        out_shape=jax.ShapeDtypeStruct((B, 1, l_out), jnp.float32),
        grid=(B,),
        in_specs=[pl.BlockSpec((None, seq_len, c0), lambda b: (b, 0, 0))]
                 + weight_specs,
        out_specs=pl.BlockSpec((None, 1, l_out), lambda b: (b, 0, 0)),
        scratch_shapes=scratch,
        compiler_params=pltpu.CompilerParams(
            dimension_semantics=("parallel",)),
    )(decoder_input, *weight_args)

    # Same final view as the PyTorch module: x.view(-1, seq_len, 1).
    return out.reshape(-1, seq_len, 1)


# ----------------------------------------------------------------------------
# Pure-JAX reference (mirrors the PyTorch forward exactly) for validation
# ----------------------------------------------------------------------------
def reference_forward(weights, params, decoder_input):
    seq_len = decoder_input.shape[1]
    x = jnp.transpose(decoder_input, (0, 2, 1))        # [B, C, L] like torch
    for layer, kernel in enumerate(weights["kernels"]):
        d = params.decoder_dilations[layer]
        p = params.decoder_paddings[layer]
        x = jax.lax.conv_general_dilated(
            x, kernel, window_strides=(1,), padding=[(p, p)],
            rhs_dilation=(d,), dimension_numbers=("NCH", "OIH", "NCH"))
        x = x + weights["biases"][layer][None, :, None]
        x = x[:, :, : x.shape[2] - p]
        x = jax.nn.relu(x)
    x = jnp.transpose(x, (0, 2, 1))
    out_size = params.discriminator_kernels[-1][0]
    x = x.reshape(-1, out_size)
    x = x @ weights["fc_w"] + weights["fc_b"]
    return x.reshape(-1, seq_len, 1)


# ----------------------------------------------------------------------------
if __name__ == "__main__":
    params = Params()
    key = jax.random.PRNGKey(0)
    key, k_in = jax.random.split(key)

    batch, seq_len, embed = 2, 8, 16
    decoder_input = jax.random.normal(k_in, (batch, seq_len, embed),
                                      jnp.float32)
    weights = init_discriminator(key, params)
    prep = prepare_weights(weights)      # hoisted: done once, not per forward

    fwd = jax.jit(lambda p, x: discriminator_forward(p, params, x))
    out = jax.block_until_ready(fwd(prep, decoder_input))

    ref = jax.block_until_ready(reference_forward(weights, params,
                                                  decoder_input))
    assert out.shape == (batch, seq_len, 1), out.shape
    assert jnp.allclose(out, ref, atol=1e-4, rtol=1e-4), (
        float(jnp.max(jnp.abs(out - ref))))

    print("KERNEL_OK")
</pallas_src>

<mosaic_0001>
module attributes {stable_mosaic.version = 11 : i64} {
  func.func @_disc_fused_kernel(%arg0: i32, %arg1: memref<1x8x16xf32, #tpu.memory_space<vmem>>, %arg2: memref<48x32xf32, #tpu.memory_space<vmem>>, %arg3: memref<1x32xf32, #tpu.memory_space<vmem>>, %arg4: memref<96x32xf32, #tpu.memory_space<vmem>>, %arg5: memref<1x32xf32, #tpu.memory_space<vmem>>, %arg6: memref<96x16xf32, #tpu.memory_space<vmem>>, %arg7: memref<1x16xf32, #tpu.memory_space<vmem>>, %arg8: memref<1x16xf32, #tpu.memory_space<vmem>>, %arg9: memref<1x1xf32, #tpu.memory_space<vmem>>, %arg10: memref<1x1x8xf32, #tpu.memory_space<vmem>>, %arg11: memref<10x16xf32, #tpu.memory_space<vmem>>, %arg12: memref<12x32xf32, #tpu.memory_space<vmem>>, %arg13: memref<16x32xf32, #tpu.memory_space<vmem>>) attributes {dimension_semantics = [#tpu.dimension_semantics<parallel>], iteration_bounds = array<i64: 2>, scalar_prefetch = 0 : i64, scratch_operands = 3 : i64, tpu.core_type = #tpu.core_type<tc>, window_params = [{transform_indices = @transform_0, window_bounds = array<i64: 1, 8, 16>}, {pipeline_mode = #tpu.pipeline_mode<synchronous>, transform_indices = @transform_1, window_bounds = array<i64: 48, 32>}, {pipeline_mode = #tpu.pipeline_mode<synchronous>, transform_indices = @transform_2, window_bounds = array<i64: 1, 32>}, {pipeline_mode = #tpu.pipeline_mode<synchronous>, transform_indices = @transform_3, window_bounds = array<i64: 96, 32>}, {pipeline_mode = #tpu.pipeline_mode<synchronous>, transform_indices = @transform_4, window_bounds = array<i64: 1, 32>}, {pipeline_mode = #tpu.pipeline_mode<synchronous>, transform_indices = @transform_5, window_bounds = array<i64: 96, 16>}, {pipeline_mode = #tpu.pipeline_mode<synchronous>, transform_indices = @transform_6, window_bounds = array<i64: 1, 16>}, {pipeline_mode = #tpu.pipeline_mode<synchronous>, transform_indices = @transform_7, window_bounds = array<i64: 1, 16>}, {pipeline_mode = #tpu.pipeline_mode<synchronous>, transform_indices = @transform_8, window_bounds = array<i64: 1, 1>}, {transform_indices = @transform_9, window_bounds = array<i64: 1, 1, 8>}]} {
    %c0 = arith.constant 0 : index
    %c0_0 = arith.constant 0 : index
    %c0_1 = arith.constant 0 : index
    %0 = vector.load %arg1[%c0, %c0_0, %c0_1] : memref<1x8x16xf32, #tpu.memory_space<vmem>>, vector<1x8x16xf32>
    %1 = vector.shape_cast %0 : vector<1x8x16xf32> to vector<8x16xf32>
    %cst = arith.constant 0.000000e+00 : f32
    %2 = vector.broadcast %cst : f32 to vector<2x16xf32>
    %c0_2 = arith.constant 0 : index
    %c0_3 = arith.constant 0 : index
    %3 = vector.load %arg11[%c0_2, %c0_3] : memref<10x16xf32, #tpu.memory_space<vmem>>, vector<2x16xf32>
    tpu.vector_store %arg11[%c0_2, %c0_3], %2 {strides = array<i32>} : memref<10x16xf32, #tpu.memory_space<vmem>>, vector<2x16xf32>,
    %c2 = arith.constant 2 : index
    %c0_4 = arith.constant 0 : index
    %4 = vector.load %arg11[%c2, %c0_4] : memref<10x16xf32, #tpu.memory_space<vmem>>, vector<8x16xf32>
    tpu.vector_store %arg11[%c2, %c0_4], %1 {strides = array<i32>} : memref<10x16xf32, #tpu.memory_space<vmem>>, vector<8x16xf32>,
    %c0_5 = arith.constant 0 : index
    %c0_6 = arith.constant 0 : index
    %5 = vector.load %arg11[%c0_5, %c0_6] : memref<10x16xf32, #tpu.memory_space<vmem>>, vector<8x16xf32>
    %c1 = arith.constant 1 : index
    %c0_7 = arith.constant 0 : index
    %6 = vector.load %arg11[%c1, %c0_7] : memref<10x16xf32, #tpu.memory_space<vmem>>, vector<8x16xf32>
    %c2_8 = arith.constant 2 : index
    %c0_9 = arith.constant 0 : index
    %7 = vector.load %arg11[%c2_8, %c0_9] : memref<10x16xf32, #tpu.memory_space<vmem>>, vector<8x16xf32>
    %8 = tpu.concatenate %5, %6, %7 in 1 : vector<8x16xf32>, vector<8x16xf32>, vector<8x16xf32> -> vector<8x48xf32>
    %c0_10 = arith.constant 0 : index
    %c0_11 = arith.constant 0 : index
    %9 = vector.load %arg2[%c0_10, %c0_11] : memref<48x32xf32, #tpu.memory_space<vmem>>, vector<48x32xf32>
    %cst_12 = arith.constant dense<0.000000e+00> : vector<8x32xf32>
    %10 = tpu.matmul %8, %9, %cst_12 {dimension_numbers = #tpu.dot_dimension_numbers<[1], [0], [0], [1], [0, 0, 1, 1], [], []>} : vector<8x48xf32>, vector<48x32xf32>, vector<8x32xf32> -> vector<8x32xf32>
    %c0_13 = arith.constant 0 : index
    %c0_14 = arith.constant 0 : index
    %11 = vector.load %arg3[%c0_13, %c0_14] : memref<1x32xf32, #tpu.memory_space<vmem>>, vector<1x32xf32>
    %12 = vector.broadcast %11 : vector<1x32xf32> to vector<8x32xf32>
    %13 = arith.addf %10, %12 : vector<8x32xf32>
    %cst_15 = arith.constant 0.000000e+00 : f32
    %14 = vector.broadcast %cst_15 : f32 to vector<8x32xf32>
    %15 = arith.maximumf %13, %14 : vector<8x32xf32>
    %cst_16 = arith.constant 0.000000e+00 : f32
    %16 = vector.broadcast %cst_16 : f32 to vector<4x32xf32>
    %c0_17 = arith.constant 0 : index
    %c0_18 = arith.constant 0 : index
    %17 = vector.load %arg12[%c0_17, %c0_18] : memref<12x32xf32, #tpu.memory_space<vmem>>, vector<4x32xf32>
    tpu.vector_store %arg12[%c0_17, %c0_18], %16 {strides = array<i32>} : memref<12x32xf32, #tpu.memory_space<vmem>>, vector<4x32xf32>,
    %c4 = arith.constant 4 : index
    %c0_19 = arith.constant 0 : index
    %18 = vector.load %arg12[%c4, %c0_19] : memref<12x32xf32, #tpu.memory_space<vmem>>, vector<8x32xf32>
    tpu.vector_store %arg12[%c4, %c0_19], %15 {strides = array<i32>} : memref<12x32xf32, #tpu.memory_space<vmem>>, vector<8x32xf32>,
    %c0_20 = arith.constant 0 : index
    %c0_21 = arith.constant 0 : index
    %19 = vector.load %arg12[%c0_20, %c0_21] : memref<12x32xf32, #tpu.memory_space<vmem>>, vector<8x32xf32>
    %c2_22 = arith.constant 2 : index
    %c0_23 = arith.constant 0 : index
    %20 = vector.load %arg12[%c2_22, %c0_23] : memref<12x32xf32, #tpu.memory_space<vmem>>, vector<8x32xf32>
    %c4_24 = arith.constant 4 : index
    %c0_25 = arith.constant 0 : index
    %21 = vector.load %arg12[%c4_24, %c0_25] : memref<12x32xf32, #tpu.memory_space<vmem>>, vector<8x32xf32>
    %22 = tpu.concatenate %19, %20, %21 in 1 : vector<8x32xf32>, vector<8x32xf32>, vector<8x32xf32> -> vector<8x96xf32>
    %c0_26 = arith.constant 0 : index
    %c0_27 = arith.constant 0 : index
    %23 = vector.load %arg4[%c0_26, %c0_27] : memref<96x32xf32, #tpu.memory_space<vmem>>, vector<96x32xf32>
    %cst_28 = arith.constant dense<0.000000e+00> : vector<8x32xf32>
    %24 = tpu.matmul %22, %23, %cst_28 {dimension_numbers = #tpu.dot_dimension_numbers<[1], [0], [0], [1], [0, 0, 1, 1], [], []>} : vector<8x96xf32>, vector<96x32xf32>, vector<8x32xf32> -> vector<8x32xf32>
    %c0_29 = arith.constant 0 : index
    %c0_30 = arith.constant 0 : index
    %25 = vector.load %arg5[%c0_29, %c0_30] : memref<1x32xf32, #tpu.memory_space<vmem>>, vector<1x32xf32>
    %26 = vector.broadcast %25 : vector<1x32xf32> to vector<8x32xf32>
    %27 = arith.addf %24, %26 : vector<8x32xf32>
    %cst_31 = arith.constant 0.000000e+00 : f32
    %28 = vector.broadcast %cst_31 : f32 to vector<8x32xf32>
    %29 = arith.maximumf %27, %28 : vector<8x32xf32>
    %cst_32 = arith.constant 0.000000e+00 : f32
    %30 = vector.broadcast %cst_32 : f32 to vector<8x32xf32>
    %c0_33 = arith.constant 0 : index
    %c0_34 = arith.constant 0 : index
    %31 = vector.load %arg13[%c0_33, %c0_34] : memref<16x32xf32, #tpu.memory_space<vmem>>, vector<8x32xf32>
    tpu.vector_store %arg13[%c0_33, %c0_34], %30 {strides = array<i32>} : memref<16x32xf32, #tpu.memory_space<vmem>>, vector<8x32xf32>,
    %c8 = arith.constant 8 : index
    %c0_35 = arith.constant 0 : index
    %32 = vector.load %arg13[%c8, %c0_35] : memref<16x32xf32, #tpu.memory_space<vmem>>, vector<8x32xf32>
    tpu.vector_store %arg13[%c8, %c0_35], %29 {strides = array<i32>} : memref<16x32xf32, #tpu.memory_space<vmem>>, vector<8x32xf32>,
    %c0_36 = arith.constant 0 : index
    %c0_37 = arith.constant 0 : index
    %33 = vector.load %arg13[%c0_36, %c0_37] : memref<16x32xf32, #tpu.memory_space<vmem>>, vector<8x32xf32>
    %c4_38 = arith.constant 4 : index
    %c0_39 = arith.constant 0 : index
    %34 = vector.load %arg13[%c4_38, %c0_39] : memref<16x32xf32, #tpu.memory_space<vmem>>, vector<8x32xf32>
    %c8_40 = arith.constant 8 : index
    %c0_41 = arith.constant 0 : index
    %35 = vector.load %arg13[%c8_40, %c0_41] : memref<16x32xf32, #tpu.memory_space<vmem>>, vector<8x32xf32>
    %36 = tpu.concatenate %33, %34, %35 in 1 : vector<8x32xf32>, vector<8x32xf32>, vector<8x32xf32> -> vector<8x96xf32>
    %c0_42 = arith.constant 0 : index
    %c0_43 = arith.constant 0 : index
    %37 = vector.load %arg6[%c0_42, %c0_43] : memref<96x16xf32, #tpu.memory_space<vmem>>, vector<96x16xf32>
    %cst_44 = arith.constant dense<0.000000e+00> : vector<8x16xf32>
    %38 = tpu.matmul %36, %37, %cst_44 {dimension_numbers = #tpu.dot_dimension_numbers<[1], [0], [0], [1], [0, 0, 1, 1], [], []>} : vector<8x96xf32>, vector<96x16xf32>, vector<8x16xf32> -> vector<8x16xf32>
    %c0_45 = arith.constant 0 : index
    %c0_46 = arith.constant 0 : index
    %39 = vector.load %arg7[%c0_45, %c0_46] : memref<1x16xf32, #tpu.memory_space<vmem>>, vector<1x16xf32>
    %40 = vector.broadcast %39 : vector<1x16xf32> to vector<8x16xf32>
    %41 = arith.addf %38, %40 : vector<8x16xf32>
    %cst_47 = arith.constant 0.000000e+00 : f32
    %42 = vector.broadcast %cst_47 : f32 to vector<8x16xf32>
    %43 = arith.maximumf %41, %42 : vector<8x16xf32>
    %c0_48 = arith.constant 0 : index
    %c0_49 = arith.constant 0 : index
    %44 = vector.load %arg8[%c0_48, %c0_49] : memref<1x16xf32, #tpu.memory_space<vmem>>, vector<1x16xf32>
    %45 = vector.broadcast %44 : vector<1x16xf32> to vector<8x16xf32>
    %46 = arith.mulf %43, %45 : vector<8x16xf32>
    %cst_50 = arith.constant dense<0.000000e+00> : vector<8xf32>
    %47 = vector.multi_reduction <add>, %46, %cst_50 [1] : vector<8x16xf32> to vector<8xf32>
    %48 = vector.shape_cast %47 : vector<8xf32> to vector<1x8xf32>
    %c0_51 = arith.constant 0 : index
    %c0_52 = arith.constant 0 : index
    %49 = vector.load %arg9[%c0_51, %c0_52] : memref<1x1xf32, #tpu.memory_space<vmem>>, vector<1x1xf32>
    %50 = vector.broadcast %49 : vector<1x1xf32> to vector<1x8xf32>
    %51 = arith.addf %48, %50 : vector<1x8xf32>
    %c0_53 = arith.constant 0 : index
    %c0_54 = arith.constant 0 : index
    %c0_55 = arith.constant 0 : index
    %52 = vector.load %arg10[%c0_53, %c0_54, %c0_55] : memref<1x1x8xf32, #tpu.memory_space<vmem>>, vector<1x1x8xf32>
    %53 = vector.shape_cast %52 : vector<1x1x8xf32> to vector<1x8xf32>
    %54 = vector.shape_cast %51 : vector<1x8xf32> to vector<1x1x8xf32>
    tpu.vector_store %arg10[%c0_53, %c0_54, %c0_55], %54 {strides = array<i32>} : memref<1x1x8xf32, #tpu.memory_space<vmem>>, vector<1x1x8xf32>,
    return
  }
  func.func @transform_0(%arg0: i32) -> (i32, i32, i32) {
    %c0_i32 = arith.constant 0 : i32
    %c0_i32_0 = arith.constant 0 : i32
    %c0_i32_1 = arith.constant 0 : i32
    return %arg0, %c0_i32, %c0_i32_0 : i32, i32, i32
  }
  func.func @transform_1(%arg0: i32) -> (i32, i32) {
    %c0_i32 = arith.constant 0 : i32
    %c0_i32_0 = arith.constant 0 : i32
    %c0_i32_1 = arith.constant 0 : i32
    return %c0_i32, %c0_i32_0 : i32, i32
  }
  func.func @transform_2(%arg0: i32) -> (i32, i32) {
    %c0_i32 = arith.constant 0 : i32
    %c0_i32_0 = arith.constant 0 : i32
    %c0_i32_1 = arith.constant 0 : i32
    return %c0_i32, %c0_i32_0 : i32, i32
  }
  func.func @transform_3(%arg0: i32) -> (i32, i32) {
    %c0_i32 = arith.constant 0 : i32
    %c0_i32_0 = arith.constant 0 : i32
    %c0_i32_1 = arith.constant 0 : i32
    return %c0_i32, %c0_i32_0 : i32, i32
  }
  func.func @transform_4(%arg0: i32) -> (i32, i32) {
    %c0_i32 = arith.constant 0 : i32
    %c0_i32_0 = arith.constant 0 : i32
    %c0_i32_1 = arith.constant 0 : i32
    return %c0_i32, %c0_i32_0 : i32, i32
  }
  func.func @transform_5(%arg0: i32) -> (i32, i32) {
    %c0_i32 = arith.constant 0 : i32
    %c0_i32_0 = arith.constant 0 : i32
    %c0_i32_1 = arith.constant 0 : i32
    return %c0_i32, %c0_i32_0 : i32, i32
  }
  func.func @transform_6(%arg0: i32) -> (i32, i32) {
    %c0_i32 = arith.constant 0 : i32
    %c0_i32_0 = arith.constant 0 : i32
    %c0_i32_1 = arith.constant 0 : i32
    return %c0_i32, %c0_i32_0 : i32, i32
  }
  func.func @transform_7(%arg0: i32) -> (i32, i32) {
    %c0_i32 = arith.constant 0 : i32
    %c0_i32_0 = arith.constant 0 : i32
    %c0_i32_1 = arith.constant 0 : i32
    return %c0_i32, %c0_i32_0 : i32, i32
  }
  func.func @transform_8(%arg0: i32) -> (i32, i32) {
    %c0_i32 = arith.constant 0 : i32
    %c0_i32_0 = arith.constant 0 : i32
    %c0_i32_1 = arith.constant 0 : i32
    return %c0_i32, %c0_i32_0 : i32, i32
  }
  func.func @transform_9(%arg0: i32) -> (i32, i32, i32) {
    %c0_i32 = arith.constant 0 : i32
    %c0_i32_0 = arith.constant 0 : i32
    %c0_i32_1 = arith.constant 0 : i32
    return %arg0, %c0_i32, %c0_i32_0 : i32, i32, i32
  }
}

</mosaic_0001>

<bundles_post_ra>
// kernel: _lambda_.1
= control target key start
LH: loop header
LB: loop body
LE: loop exit
PB: predicated region body
PF: predicated region fallthrough
CT: control target
= control target key end

     0   :  { %s1328_s0 = inlined_call_operand.vmem [shape: f32[2,8,16], index: 0, kind: input, shape index: {}]   ;;  %s1329_s1 = inlined_call_operand.vmem [shape: f32[48,32], index: 1, kind: input, shape index: {}]   ;;  %s1330_s2 = inlined_call_operand.vmem [shape: f32[1,32], index: 2, kind: input, shape index: {}]   ;;  %s1331_s3 = inlined_call_operand.vmem [shape: f32[96,32], index: 3, kind: input, shape index: {}]   ;;  %s1332_s4 = inlined_call_operand.vmem [shape: f32[1,32], index: 4, kind: input, shape index: {}]   ;;  %s1333_s5 = inlined_call_operand.vmem [shape: f32[96,16], index: 5, kind: input, shape index: {}]   ;;  %s1334_s6 = inlined_call_operand.vmem [shape: f32[1,16], index: 6, kind: input, shape index: {}]   ;;  %s1335_s7 = inlined_call_operand.vmem [shape: f32[1,16], index: 7, kind: input, shape index: {}]   ;;  %s1336_s8 = inlined_call_operand.<no memory space> [shape: f32[1,1], index: 8, kind: input, shape index: {}]   ;;  %s1337_s9 = inlined_call_operand.hbm [shape: f32[2,1,8], index: 9, kind: output, shape index: {}]  }
   0x1   :  { %v14_v0 = vstv %s1336_s8 }
   0x2   :  { %15 = vst [vmem:[#allocation5] sm:$0x1] %v14_v0 }
   0x3   :  { %16 = vsyncpa [#allocation7], 0 }
   0x4   :  { %18 = vsyncpa [#allocation7 + $0x1], 0  ;;  %s1090_s11 = smov 0   ;;  %s1092_s12 = smov 0  }
   0x5   :  { %s1094_s13 = smov 0   ;;  %s1096_s14 = smov 0  }
   0x6 LB: > { %s1111_s8 = sadd.s32 4294967295, %s1027_s14   ;;  %s755_s15 = sadd.s32 4294967294, %s1027_s14   ;;  %s1027_s14 = sphi %s1096_s14, %s1343_s14   ;;  %s1023_s13 = sphi %s1094_s13, %s1342_s13   ;;  %s1019_s12 = sphi %s1092_s12, %s1341_s12   ;;  %s1015_s11 = sphi %s1090_s11, %s1340_s11  }
   0x7   : > { %s1115_s16 = sadd.s32 1, %s1027_s14   ;;  %s225_s17 = sadd.s32 1, %s1023_s13 }
   0x8   : > { %s222_s18 = ssub.s32 %s1027_s14, %s1115_s16  ;;  %p235_p0 = scmp.ne.s32.totalorder %s1023_s13, %s1019_s12 }
   0x9   : > { %p223_p1 = scmp.eq.s32.totalorder %s222_s18, 0  ;;  %p236_p2 = scmp.eq.s32.totalorder %s1111_s8, 1 }
   0xa   : > { %p241_p3 = scmp.ne.s32.totalorder %s1019_s12, %s1015_s11  ;;  %p242_p4 = scmp.eq.s32.totalorder %s755_s15, 1 }
   0xb   : > { %s1126_s19 = scalar_select %p223_p1, %s1023_s13, %s225_s17  }
   0xc   : > { %p1128_p5 = por %p236_p2, %p235_p0  ;;  %p1132_p6 = por %p242_p4, %p241_p3 }
   0xd   : > { %p758_p7 = scmp.ge.s32.totalorder %s1027_s14, 1  ;;  %p291_p8 = scmp.lt.s32.totalorder %s1027_s14, 3 }
   0xf   : > { %p292_p9 = pnand %p758_p7, %p291_p8 }
  0x10   : > { %p325_p10 = scmp.lt.s32.totalorder (!%p292_p9), %s1111_s8, 1  ;;  %vm330_vm0 = vcmask (!%p292_p9), 123904   ;;  %v1029_v1 = vmov (!%p292_p9), 0.0   ;;  %v1030_v2 = vmov (!%p292_p9), 0.0|0.0   ;;  %v348_v3 = vld [vmem:[%s1329_s1] sm:$0xff] (!%p292_p9)  ;;  %v349_v4 = vld [vmem:[%s1329_s1 + $0x8] sm:$0xff] (!%p292_p9) }
  0x11   : > { %295 = sbr.rel (%p292_p9) target bundleno = 1222 (0x4c6), region = 56  ;;  %331 = vst.msk [vmem:[#allocation2] sm:$0x3] (!%p292_p9), %vm330_vm0, %v1029_v1  ;;  %872 = vmatprep.subr.bf16.mxu0 (!%p292_p9), %v1030_v2  ;;  %v350_v5 = vld [vmem:[%s1329_s1 + $0x10] sm:$0xff] (!%p292_p9)  ;;  %881 = vmatprep.subr.bf16.mxu1 (!%p292_p9), %v1030_v2  ;;  %v873_v6 = vpack.c.bf16 (!%p292_p9), %v349_v4, %v348_v3  ;;  %v351_v7 = vld [vmem:[%s1329_s1 + $0x18] sm:$0xff] (!%p292_p9)  ;;  %vm346_vm1 = vcmask (!%p292_p9), 261120  }
  0x12   : > { %547 = vst.msk [vmem:[#allocation4] sm:$0xff] (!%p292_p9), %vm346_vm1, %v1029_v1  ;;  %vm332_vm2 = vcmask (!%p292_p9), 130048   ;;  %v876_v8 = vpack.c.bf16 (!%p292_p9), %v351_v7, %v350_v5  ;;  %v352_v9 = vld [vmem:[%s1329_s1 + $0x20] sm:$0xff] (!%p292_p9)  ;;  %v353_v10 = vld [vmem:[%s1329_s1 + $0x28] sm:$0xff] (!%p292_p9)  ;;  %vm1031_vm3 = vmmov (!%p292_p9), 0   ;;  %s1032_s26 = smov (!%p292_p9), 16  }
  0x13   : > { %874 = vmatpush3.bf16.msra.mxu0 (!%p292_p9), %v873_v6  ;;  %815 = vmatprep.mubr.msk.f32.mxu0 (!%p292_p9), %vm1031_vm3, %v1029_v1  ;;  %v879_v12 = vpack.c.bf16 (!%p292_p9), %v353_v10, %v352_v9  ;;  %s1033_s27 = smov (!%p292_p9), 32   ;;  %vm361_vm4 = vcmask (!%p292_p9), 392192   ;;  %vm436_vm5 = vcmask (!%p292_p9), 257024   ;;  %v453_v20 = vld [vmem:[%s1331_s3] sm:$0xff] (!%p292_p9)  ;;  %v454_v21 = vld [vmem:[%s1331_s3 + $0x8] sm:$0xff] (!%p292_p9)  ;;  %v455_v22 = vld [vmem:[%s1331_s3 + $0x10] sm:$0xff] (!%p292_p9) }
  0x14   : > { %875 = vmatprep.subr.bf16.mxu0 (!%p292_p9), %v1030_v2  ;;  %842 = vmatprep.mubr.msk.f32.mxu1 (!%p292_p9), %vm1031_vm3, %v1029_v1  ;;  %437 = vst.msk [vmem:[#allocation3] sm:$0xf] (!%p292_p9), %vm436_vm5, %v1029_v1  ;;  %v882_v23 = vpack.c.bf16 (!%p292_p9), %v454_v21, %v453_v20  ;;  %v456_v24 = vld [vmem:[%s1331_s3 + $0x18] sm:$0xff] (!%p292_p9)  ;;  %v457_v26 = vld [vmem:[%s1331_s3 + $0x20] sm:$0xff] (!%p292_p9)  ;;  %v458_v27 = vld [vmem:[%s1331_s3 + $0x28] sm:$0xff] (!%p292_p9)  ;;  %s1034_s30 = smov (!%p292_p9), 64  }
  0x15   : > { %v885_v25 = vpack.c.bf16 (!%p292_p9), %v456_v24, %v455_v22  ;;  %v888_v28 = vpack.c.bf16 (!%p292_p9), %v458_v27, %v457_v26  ;;  %v459_v29 = vld [vmem:[%s1331_s3 + $0x30] sm:$0xff] (!%p292_p9)  ;;  %v460_v30 = vld [vmem:[%s1331_s3 + $0x38] sm:$0xff] (!%p292_p9)  ;;  %v461_v32 = vld [vmem:[%s1331_s3 + $0x40] sm:$0xff] (!%p292_p9)  ;;  %vm451_vm6 = vcmask (!%p292_p9), 523264   ;;  %vm472_vm7 = vcmask (!%p292_p9), 785408   ;;  %s323_s24 = sand.u32 (!%p292_p9), 1, %s1019_s12  }
  0x16   : > { %883 = vmatpush3.bf16.msra.mxu1 (!%p292_p9), %v882_v23  ;;  %v891_v31 = vpack.c.bf16 (!%p292_p9), %v460_v30, %v459_v29  ;;  %v462_v33 = vld [vmem:[%s1331_s3 + $0x48] sm:$0xff] (!%p292_p9)  ;;  %v760_v35 = vld [vmem:[%s1330_s2] ss:$0 sm:$0xff] (!%p292_p9)  ;;  %v463_v36 = vld [vmem:[%s1331_s3 + $0x50] sm:$0xff] (!%p292_p9)  ;;  %v672_v26 = vlaneseq (!%p292_p9)  ;;  %s767_s25 = sshll.u32 (!%p292_p9), %s1111_s8, 4  ;;  %vm685_vm8 = vcmask (!%p292_p9), 57344  }
  0x17   : > { %877 = vmatpush3.bf16.msra.mxu0 (!%p292_p9), %v876_v8  ;;  %884 = vmatprep.subr.bf16.mxu1 (!%p292_p9), %v1030_v2  ;;  %v894_v34 = vpack.c.bf16 (!%p292_p9), %v462_v33, %v461_v32  ;;  %v464_v37 = vld [vmem:[%s1331_s3 + $0x58] sm:$0xff] (!%p292_p9)  ;;  %v562_v50 = vld [vmem:[%s1333_s5] sm:$0xff] (!%p292_p9)  ;;  %v563_v51 = vld [vmem:[%s1333_s5 + $0x8] sm:$0xff] (!%p292_p9)  ;;  %s1286_s15 = scalar_lea.hbm (!%p292_p9), %s1337_s9, %s767_s25  ;;  %s688_s17 = scalar_lea.sflag (!%p292_p9), [#allocation7], %s323_s24 }
  0x18   : > { %s326_s28 = scalar_select %p325_p10, %s1111_s8, 1  ;;  %878 = vmatprep.subr.bf16.mxu0 %v1030_v2  ;;  %v897_v39 = vpack.c.bf16 %v464_v37, %v463_v36  ;;  %v564_v52 = vld [vmem:[%s1333_s5 + $0x10] sm:$0xff]  ;;  %v900_v53 = vpack.c.bf16 %v563_v51, %v562_v50  ;;  %v565_v54 = vld [vmem:[%s1333_s5 + $0x18] sm:$0xff]  ;;  %v566_v56 = vld [vmem:[%s1333_s5 + $0x20] sm:$0xff]  ;;  %v673_v27 = vshrl.u32 %v672_v26, 7  ;;  %v679_v30 = vand.u32 127, %v672_v26 }
  0x19   : > { %v903_v55 = vpack.c.bf16 %v565_v54, %v564_v52  ;;  %v567_v57 = vld [vmem:[%s1333_s5 + $0x28] sm:$0xff]  ;;  %v568_v59 = vld [vmem:[%s1333_s5 + $0x30] sm:$0xff]  ;;  %v569_v60 = vld [vmem:[%s1333_s5 + $0x38] sm:$0xff]  ;;  %s1036_s8 = smov [#allocation6]  }
  0x1a   : > { %s759_s10 = sshll.u32 %s326_s28, 3  ;;  %886 = vmatpush3.bf16.msra.mxu1 %v885_v25  ;;  %v906_v58 = vpack.c.bf16 %v567_v57, %v566_v56  ;;  %v909_v61 = vpack.c.bf16 %v569_v60, %v568_v59  ;;  %v570_v62 = vld [vmem:[%s1333_s5 + $0x40] sm:$0xff]  ;;  %v571_v63 = vld [vmem:[%s1333_s5 + $0x48] sm:$0xff]  ;;  %v573_v3 = vld [vmem:[%s1333_s5 + $0x58] sm:$0xff]  ;;  %v682_v32 = vsub.s32 %v679_v30, %v673_v27  ;;  %s969_s22 = sshll.u32 %s1036_s8, 4  ;;  %s970_s22 = int_to_ptr.vmem [resolvable:$false] %s969_s22 }
  0x1b   : > { %s328_s18 = scalar_lea.vmem %s1328_s0, %s759_s10  ;;  %880 = vmatpush3.bf16.msra.mxu0 %v879_v12  ;;  %887 = vmatprep.subr.bf16.mxu1 %v1030_v2  ;;  %v912_v0 = vpack.c.bf16 %v571_v63, %v570_v62  ;;  %v762_v5 = vld [vmem:[%s1332_s4] ss:$0 sm:$0xff]  ;;  %s971_s23 = scalar_lea.vmem %s970_s22, 32 }
  0x1c   : > { %v329_v11 = vld [vmem:[%s328_s18] sm:$0xff]  ;;  %899 = vmatprep.subr.bf16.mxu0 %v1030_v2 }
  0x1d   : > { %333 = vst.msk [vmem:[#allocation2 + $0x2] sm:$0xff] %vm332_vm2, %v329_v11  ;;  %v549_v12 = vld [vmem:[#allocation4] sm:$0xff] }
  0x1e   : > { %889 = vmatpush3.bf16.msra.mxu1 %v888_v28  ;;  %v766_v22 = vld [vmem:[%s1335_s7] ss:$0 sm:$0xff]  ;;  %v674_v28 = vsub.s32 0, %v673_v27 }
  0x1f   : > { %890 = vmatprep.subr.bf16.mxu1 %v1030_v2 }
  0x22   : > { %892 = vmatpush3.bf16.msra.mxu1 %v891_v31 }
  0x23   : > { %893 = vmatprep.subr.bf16.mxu1 %v1030_v2 }
  0x24   : > { %v335_v13 = vld [vmem:[#allocation2 + $0x1] sm:$0xff] }
  0x25   : > { %338 = vrot.lane.b32.xlu0 %v335_v13, %s1032_s26  ;;  %v336_v14 = vld [vmem:[#allocation2 + $0x2] sm:$0xff]  ;;  %s324_s26 = scalar_lea.vmem [#allocation6], %s323_s24 }
  0x26   : > { %v334_v16 = vld [vmem:[#allocation2] sm:$0xff]  ;;  %895 = vmatpush3.bf16.msra.mxu1 %v894_v34  ;;  %s700_s28 = sshll.u32 %s324_s26, 4  ;;  %s1288_s28 = int_to_ptr.vmem [resolvable:$true] %s700_s28 }
  0x27   : > { %896 = vmatprep.subr.bf16.mxu1 %v1030_v2  ;;  %s965_s18 = scalar_lea.vmem %s1288_s28, 16  ;;  %p972_p0 = scmp.lt.s32.totalorder %s1288_s28, %s970_s22 }
  0x28   : > { %p966_p11 = scmp.ne.s32.totalorder %s1288_s28, %s965_s18  ;;  %p973_p1 = scmp.lt.s32.totalorder %s971_s23, %s965_s18 }
  0x29   : > { %342 = vrot.lane.b32.xlu0 %v336_v14, %s1033_s27 }
  0x2a   : > { %898 = vmatpush3.bf16.msra.mxu1 %v897_v39  ;;  %p967_p12 = pnand %p966_p11, %p1128_p5  ;;  %p974_p2 = por %p973_p1, %p972_p0 }
  0x2c   : > { %p968_p13 = pneg %p967_p12 }
  0x2e   : > { %p975_p3 = pnand %p974_p2, %p968_p13 }
  0x97   : > { %v339_v15 = vpop.permute.xlu0 %338 }
  0x98   : > { %v345_v17 = vsel %vm332_vm2, %v334_v16, %v339_v15  ;;  %v666_v16 = vld [vmem:[#allocation5] sm:$0x1] }
  0x9b   : > { %v343_v18 = vpop.permute.xlu0 %342 }
  0x9c   : > { %v347_v19 = vsel %vm346_vm1, %v345_v17, %v343_v18  ;;  %v1035_v17 = vmov 0   ;;  %v764_v18 = vld [vmem:[%s1334_s6] ss:$0 sm:$0xff] }
  0x9d   : > { %816 = vmatmul.mubr.msk.f32.vlgmr.msra.gmra.mrb[0].mxu0 %vm361_vm4, %v347_v19  ;;  %963 = vset.pattern.permute.xlu1 %v1035_v17 }
  0x9e   : > { %869 = vmatprep.mubr.msk.f32.mxu0 %vm1031_vm3, %v1029_v1  ;;  %901 = vmatpush3.bf16.msra.mxu0 %v900_v53  ;;  %v572_v1 = vld [vmem:[%s1333_s5 + $0x50] sm:$0xff] }
  0x9f   : > { %902 = vmatprep.subr.bf16.mxu0 %v1030_v2  ;;  %v915_v4 = vpack.c.bf16 %v573_v3, %v572_v1  ;;  %964 = vset.pattern.permute.xlu0 %v1035_v17 }
  0xa2   : > { %904 = vmatpush3.bf16.msra.mxu0 %v903_v55 }
  0xa3   : > { %905 = vmatprep.subr.bf16.mxu0 %v1030_v2 }
  0xa6   : > { %907 = vmatpush3.bf16.msra.mxu0 %v906_v58 }
  0xa7   : > { %908 = vmatprep.subr.bf16.mxu0 %v1030_v2 }
  0xaa   : > { %910 = vmatpush3.bf16.msra.mxu0 %v909_v61 }
  0xab   : > { %911 = vmatprep.subr.bf16.mxu0 %v1030_v2 }
  0xae   : > { %913 = vmatpush3.bf16.msra.mxu0 %v912_v0 }
  0xaf   : > { %914 = vmatprep.subr.bf16.mxu0 %v1030_v2 }
  0xb2   : > { %916 = vmatpush3.bf16.msra.mxu0 %v915_v4 }
 0x170   : > { %v431_v38 = vpop.f32.mrb[0].mxu0 }
 0x171   : > { %v432_v40 = vadd.f32 %v760_v35, %v431_v38  ;;  %v817_v41 = vpop.f32.mrb[1].mxu0 }
 0x173   : > { %v435_v42 = vmax.f32 %v432_v40, 0.0 }
 0x175   : > { %438 = vst.msk [vmem:[#allocation3 + $0x4] sm:$0xff] %vm346_vm1, %v435_v42 }
 0x17c   : > { %v440_v43 = vld [vmem:[#allocation3 + $0x2] sm:$0xff] }
 0x17d   : > { %443 = vrot.lane.b32.xlu1 %v440_v43, %s1033_s27  ;;  %v441_v44 = vld [vmem:[#allocation3 + $0x4] sm:$0xff] }
 0x17e   : > { %v439_v46 = vld [vmem:[#allocation3] sm:$0xff] }
 0x181   : > { %447 = vrot.lane.b32.xlu1 %v441_v44, %s1034_s30 }
 0x1ef   : > { %v444_v45 = vpop.permute.xlu1 %443 }
 0x1f0   : > { %v450_v47 = vsel %vm346_vm1, %v439_v46, %v444_v45 }
 0x1f3   : > { %v448_v48 = vpop.permute.xlu1 %447 }
 0x1f4   : > { %v452_v49 = vsel %vm451_vm6, %v450_v47, %v448_v48 }
 0x1f5   : > { %843 = vmatmul.mubr.msk.f32.vlgmr.msra.gmra.mrb[0].mxu1 %vm472_vm7, %v452_v49 }
 0x2c8   : > { %v542_v6 = vpop.f32.mrb[0].mxu1 }
 0x2c9   : > { %v543_v7 = vadd.f32 %v762_v5, %v542_v6  ;;  %v844_v8 = vpop.f32.mrb[1].mxu1 }
 0x2cb   : > { %v546_v9 = vmax.f32 %v543_v7, 0.0 }
 0x2cd   : > { %548 = vst.msk [vmem:[#allocation4 + $0x8] sm:$0xff] %vm346_vm1, %v546_v9 }
 0x2d4   : > { %v551_v10 = vld [vmem:[#allocation4 + $0x8] sm:$0xff] }
 0x2d5   : > { %v550_v11 = vld [vmem:[#allocation4 + $0x4] sm:$0xff]  ;;  %557 = vrot.lane.b32.xlu1 %v551_v10, %s1034_s30 }
 0x2d6   : > { %553 = vrot.lane.b32.xlu0 %v550_v11, %s1033_s27 }
 0x2d9   : > { %669 = vperm.xlu1 %963, %v666_v16  }
 0x347   : > { %v558_v13 = vpop.permute.xlu1 %557 }
 0x348   : > { %v554_v2 = vpop.permute.xlu0 %553 }
 0x349   : > { %v560_v14 = vsel %vm346_vm1, %v549_v12, %v554_v2 }
 0x34a   : > { %v561_v15 = vsel %vm451_vm6, %v560_v14, %v558_v13 }
 0x34b   : > { %870 = vmatmul.mubr.msk.f32.vlgmr.msra.gmra.mrb[2].mxu0 %vm472_vm7, %v561_v15 }
 0x358   : > { %v670_v29 = vpop.permute.xlu1 %669 }
 0x359   : > { %v675_v31 = vrot.slane %v670_v29, %v674_v28 }
 0x41e   : > { %v650_v19 = vpop.f32.mrb[2].mxu0 }
 0x41f   : > { %v651_v20 = vadd.f32 %v764_v18, %v650_v19  ;;  %v871_v21 = vpop.f32.mrb[3].mxu0 }
 0x421   : > { %v654_v23 = vmax.f32 %v651_v20, 0.0 }
 0x423   : > { %v662_v24 = vmul.f32 %v766_v22, %v654_v23 }
 0x425   : > { %v663_v25 = vsel %vm332_vm2, %v662_v24, 0.0 }
 0x426   : > { %664 = vadd.xlane.f32.xlu0 %v663_v25 }
 0x4b3   : > { %v665_v33 = vpop.xlane.xlu0 %664 }
 0x4b4   : > { %v676_v34 = vadd.f32 %v675_v31, %v665_v33 }
 0x4b6   : > { %v683_v35 = vrot.slane %v676_v34, %v682_v32 }
 0x4b8   : > { %686 = vst.msk [vmem:[%s324_s26] sm:$0x1] %vm685_vm8, %v683_v35 }
 0x4b9   : > { %978 = shalt.err (!%p975_p3)
}
 0x4ba   : > { %s979_s27 = scalar_lea.hbm %s1286_s15, 16  ;;  %s983_s25 = scalar_lea.hbm %s1337_s9, 32 }
 0x4bb   : > { %p980_p4 = scmp.ne.s32.totalorder %s1286_s15, %s979_s27  ;;  %p984_p9 = scmp.lt.u32.totalorder %s1286_s15, %s1337_s9 }
 0x4bc   : > { %p985_p10 = scmp.lt.u32.totalorder %s983_s25, %s979_s27  ;;  %p987_p12 = scmp.lt.u32.totalorder %s979_s27, %s1286_s15 }
 0x4bd   : > { %p981_p7 = pnand %p980_p4, %p1128_p5 }
 0x4be   : > { %p986_p11 = por %p985_p10, %p984_p9 }
 0x4bf   : > { %p982_p8 = pneg %p981_p7 }
 0x4c0   : > { %p988_p13 = por %p987_p12, %p986_p11 }
 0x4c2   : > { %p989_p0 = pnand %p988_p13, %p982_p8 }
 0x4c4   : > { %992 = shalt.err (!%p989_p0)
}
 0x4c5   : > { %917 = dma.vmem_to_hbm [thread:$0]  (%p1128_p5), %s1288_s28, 16, %s1286_s15, %s688_s17  }
 0x4c6 PF: > { %p923_p1 = scmp.ge.s32.totalorder %s1027_s14, 2  ;;  %s712_s10 = sand.u32 1, %s1015_s11  }
 0x4c7   : > { %s713_s18 = scalar_lea.sflag [#allocation7], %s712_s10 }
 0x4c8   : > { %p920_p2 = pnand %p923_p1, %p1132_p6 }
 0x4ca   : > { %1010 = dma.done.wait (!%p920_p2), %s713_s18, 16  }
 0x4cb   : > { %1012 = vsyncadd (!%p920_p2), %s713_s18, 4294967280  ;;  %p21_p3 = scmp.ge.s32.totalorder %s1115_s16, 4   ;;  %s1340_s11 = smov %s1019_s12 }
 0x4cc   : > { %s1341_s12 = smov %s1023_s13  ;;  %s1342_s13 = smov %s1126_s19 }
 0x4cd   : > { %s1343_s14 = smov %s1115_s16  ;;  %23 = sbr.rel (!%p21_p3) target bundleno = 6 (0x6), region = 91 }
 0x4d4   :  { %717 = vsyncpa [#allocation7], 1 }
 0x4d5   :  { %719 = vsyncpa [#allocation7 + $0x1], 1 }

</bundles_post_ra>
